<compile_context>
chip_gen: v6e
topology: v6e:2x2x1
jax: 0.10.0
libtpu: 0.0.40
codegen_flags: <defaults>
</compile_context>

<pallas_src>
import jax
import jax.numpy as jnp
from jax.experimental import pallas as pl
from jax.experimental.pallas import tpu as pltpu

# ----------------------------- configuration --------------------------------
B, CIN, H, W = 2, 4, 16, 16          # input: (B, CIN, H, W) NCHW like PyTorch
HW = H * W
M = B * HW                           # rows of the fused stem matmul
K = 9 * CIN                          # im2col contraction dim
FEAT = 32                            # backbone feature width (== _fc in-features)
NUM_CLASSES = 8                      # num_classes
TAU_ARR = (0.0, 0.5, 1.0)            # tau_arr
T = len(TAU_ARR)


# ----------------------------- Pallas kernel ---------------------------------
def _fused_kernel(patches_ref, wc_ref, bc_ref, pool_ref, wsall_ref, wet_ref,
                  be_ref, out_ref):
    """Fused stem + pool + tau-logit ensemble + ensemble classifier + sigmoid.

    patches_ref: (M, K) bf16            wc_ref:    (K, FEAT) bf16
    bc_ref:      (1, FEAT) f32          pool_ref:  (B, M) f32   (segment mean)
    wsall_ref:   (FEAT, T*C) bf16       wet_ref:   (T*C, C) bf16
    be_ref:      (1, C) f32             out_ref:   (B, C) f32
    """
    # 3x3 conv-as-matmul + bias + swish (f32 accumulation on the MXU).
    h = jnp.dot(patches_ref[...], wc_ref[...],
                preferred_element_type=jnp.float32)            # (M, F)
    h = h + bc_ref[...]
    h = h * jax.nn.sigmoid(h)                                   # swish (EUP)

    # Per-batch global average pool on the MXU (1/HW folded into pool_ref).
    rep = jnp.dot(pool_ref[...], h,
                  preferred_element_type=jnp.float32)           # (B, F)

    # Tau-renormalized FC ensemble: one matmul against the pre-stacked,
    # pre-transposed (F, T*C) weight, then swish == hstack of per-tau swish(fc).
    z = jnp.dot(rep.astype(jnp.bfloat16), wsall_ref[...],
                preferred_element_type=jnp.float32)             # (B, T*C)
    ens = z * jax.nn.sigmoid(z)

    # Ensemble classifier (weight pre-transposed) + output sigmoid.
    y = jnp.dot(ens.astype(jnp.bfloat16), wet_ref[...],
                preferred_element_type=jnp.float32) + be_ref[...]
    out_ref[...] = jax.nn.sigmoid(y)                            # (B, C)


# ----------------------------- wrappers --------------------------------------
def _im2col_3x3(x_nhwc):
    """(B, H, W, C) -> (B, H*W, 9*C) patches for a same-padded 3x3 conv."""
    b, h, w, c = x_nhwc.shape
    xp = jnp.pad(x_nhwc, ((0, 0), (1, 1), (1, 1), (0, 0)))
    cols = [xp[:, dy:dy + h, dx:dx + w, :] for dy in range(3) for dx in range(3)]
    patches = jnp.stack(cols, axis=3)               # (B, H, W, 9, C)
    return patches.reshape(b, h * w, 9 * c)


def pack_params(params, taus=TAU_ARR):
    """One-time, input-independent packing — hoisted off the per-call hot path."""
    # Conv weight (torch OIHW) -> (9*CIN, FEAT), bf16 for the MXU.
    wc = jnp.transpose(params["w_conv"], (2, 3, 1, 0)).reshape(K, FEAT)

    # Segment-mean pooling matrix (1/HW folded in): row b averages batch b's rows.
    pool = jnp.kron(jnp.eye(B, dtype=jnp.float32),
                    jnp.full((1, HW), 1.0 / HW, jnp.float32))          # (B, M)

    # Hoisted tau renorm: stacked (T*C, F), then transposed -> (F, T*C).
    # Uses normB ** tau directly (matches reference, incl. zero-norm rows).
    norm_b = params["normB"]
    ws_all = jnp.concatenate(
        [params["w_fc"] / (norm_b[:, None] ** float(t)) for t in taus], axis=0)

    return {
        "wc": wc.astype(jnp.bfloat16),
        "bc": params["b_conv"].reshape(1, FEAT).astype(jnp.float32),
        "pool": pool,
        "wsall_t": ws_all.T.astype(jnp.bfloat16),                      # (F, T*C)
        "wet_t": params["w_ens"].T.astype(jnp.bfloat16),               # (T*C, C)
        "be": params["b_ens"].reshape(1, NUM_CLASSES).astype(jnp.float32),
    }


def forward_packed(x_nchw, packed):
    """Hot path: im2col of x + one fused pallas_call."""
    x = jnp.transpose(x_nchw, (0, 2, 3, 1)).astype(jnp.float32)        # NHWC
    patches = _im2col_3x3(x).reshape(M, K).astype(jnp.bfloat16)        # (M, K)

    vmem = pl.BlockSpec(memory_space=pltpu.MemorySpace.VMEM)
    out = pl.pallas_call(
        _fused_kernel,
        out_shape=jax.ShapeDtypeStruct((B, NUM_CLASSES), jnp.float32),
        in_specs=[vmem] * 7,
        out_specs=vmem,
    )(patches, packed["wc"], packed["bc"], packed["pool"],
      packed["wsall_t"], packed["wet_t"], packed["be"])
    # dropout: identity at inference; .squeeze(): no-op for B > 1 (torch parity).
    return jnp.squeeze(out)


def tau_logit_ensemble_forward(x_nchw, params, taus=TAU_ARR):
    return forward_packed(x_nchw, pack_params(params, taus))


# ----------------------------- pure-JAX reference ----------------------------
def reference_forward(x_nchw, params, taus=TAU_ARR):
    x = jnp.transpose(x_nchw, (0, 2, 3, 1)).astype(jnp.float32)
    patches = _im2col_3x3(x)
    wc = jnp.transpose(params["w_conv"], (2, 3, 1, 0)).reshape(K, FEAT)
    h = jnp.einsum("bpk,kf->bpf", patches, wc) + params["b_conv"]
    h = h * jax.nn.sigmoid(h)
    rep = jnp.mean(h, axis=1)
    logits = []
    for tau in taus:
        ws = params["w_fc"] / (params["normB"][:, None] ** tau)
        z = rep @ ws.T
        logits.append(z * jax.nn.sigmoid(z))
    ens = jnp.concatenate(logits, axis=1)
    return jnp.squeeze(jax.nn.sigmoid(ens @ params["w_ens"].T + params["b_ens"]))


# ----------------------------- main -------------------------------------------
def init_params(key):
    ks = jax.random.split(key, 6)
    w_conv = 0.1 * jax.random.normal(ks[0], (FEAT, CIN, 3, 3), jnp.float32)   # torch conv layout
    b_conv = 0.1 * jax.random.normal(ks[1], (FEAT,), jnp.float32)
    w_fc = 0.2 * jax.random.normal(ks[2], (NUM_CLASSES, FEAT), jnp.float32)   # _fc weight
    norm_b = jnp.linalg.norm(w_fc, ord=2, axis=1)                             # self.normB
    w_ens = 0.2 * jax.random.normal(ks[3], (NUM_CLASSES, T * NUM_CLASSES), jnp.float32)
    b_ens = 0.1 * jax.random.normal(ks[4], (NUM_CLASSES,), jnp.float32)
    return {"w_conv": w_conv, "b_conv": b_conv, "w_fc": w_fc, "normB": norm_b,
            "w_ens": w_ens, "b_ens": b_ens}


if __name__ == "__main__":
    key = jax.random.PRNGKey(0)
    kx, kp = jax.random.split(key)
    x = jax.random.normal(kx, (B, CIN, H, W), jnp.float32)   # NCHW, like PyTorch
    params = init_params(kp)

    # Weight packing is done once (outside the jitted per-call path).
    packed = pack_params(params)
    fwd = jax.jit(forward_packed)

    out = fwd(x, packed)
    out = jax.block_until_ready(out)

    ref = reference_forward(x, params)
    assert out.shape == (B, NUM_CLASSES), out.shape
    # Tolerance accounts for bf16 matmul operands (f32 accumulation) vs f32 ref;
    # outputs are post-sigmoid in (0, 1).
    assert jnp.allclose(out, ref, rtol=1e-2, atol=1e-2), (out, ref)
    print("KERNEL_OK")
</pallas_src>

<mosaic_0001>
module attributes {stable_mosaic.version = 11 : i64} {
  func.func @_fused_kernel(%arg0: memref<512x36xbf16, #tpu.memory_space<vmem>>, %arg1: memref<36x32xbf16, #tpu.memory_space<vmem>>, %arg2: memref<1x32xf32, #tpu.memory_space<vmem>>, %arg3: memref<2x512xf32, #tpu.memory_space<vmem>>, %arg4: memref<32x24xbf16, #tpu.memory_space<vmem>>, %arg5: memref<24x8xbf16, #tpu.memory_space<vmem>>, %arg6: memref<1x8xf32, #tpu.memory_space<vmem>>, %arg7: memref<2x8xf32, #tpu.memory_space<vmem>>) attributes {dimension_semantics = [], scalar_prefetch = 0 : i64, scratch_operands = 0 : i64, tpu.core_type = #tpu.core_type<tc>} {
    %c0 = arith.constant 0 : index
    %c0_0 = arith.constant 0 : index
    %0 = vector.load %arg0[%c0, %c0_0] : memref<512x36xbf16, #tpu.memory_space<vmem>>, vector<512x36xbf16>
    %c0_1 = arith.constant 0 : index
    %c0_2 = arith.constant 0 : index
    %1 = vector.load %arg1[%c0_1, %c0_2] : memref<36x32xbf16, #tpu.memory_space<vmem>>, vector<36x32xbf16>
    %cst = arith.constant dense<0.000000e+00> : vector<512x32xf32>
    %2 = tpu.matmul %0, %1, %cst {dimension_numbers = #tpu.dot_dimension_numbers<[1], [0], [0], [1], [0, 0, 1, 1], [], []>} : vector<512x36xbf16>, vector<36x32xbf16>, vector<512x32xf32> -> vector<512x32xf32>
    %c0_3 = arith.constant 0 : index
    %c0_4 = arith.constant 0 : index
    %3 = vector.load %arg2[%c0_3, %c0_4] : memref<1x32xf32, #tpu.memory_space<vmem>>, vector<1x32xf32>
    %4 = vector.broadcast %3 : vector<1x32xf32> to vector<512x32xf32>
    %5 = arith.addf %2, %4 : vector<512x32xf32>
    %6 = arith.negf %5 : vector<512x32xf32>
    %7 = math.exp %6 : vector<512x32xf32>
    %cst_5 = arith.constant 1.000000e+00 : f32
    %8 = vector.broadcast %cst_5 : f32 to vector<512x32xf32>
    %9 = arith.addf %8, %7 : vector<512x32xf32>
    %10 = arith.divf %8, %9 : vector<512x32xf32>
    %11 = arith.mulf %5, %10 : vector<512x32xf32>
    %c0_6 = arith.constant 0 : index
    %c0_7 = arith.constant 0 : index
    %12 = vector.load %arg3[%c0_6, %c0_7] : memref<2x512xf32, #tpu.memory_space<vmem>>, vector<2x512xf32>
    %cst_8 = arith.constant dense<0.000000e+00> : vector<2x32xf32>
    %13 = tpu.matmul %12, %11, %cst_8 {dimension_numbers = #tpu.dot_dimension_numbers<[1], [0], [0], [1], [0, 0, 1, 1], [], []>} : vector<2x512xf32>, vector<512x32xf32>, vector<2x32xf32> -> vector<2x32xf32>
    %14 = arith.truncf %13 : vector<2x32xf32> to vector<2x32xbf16>
    %c0_9 = arith.constant 0 : index
    %c0_10 = arith.constant 0 : index
    %15 = vector.load %arg4[%c0_9, %c0_10] : memref<32x24xbf16, #tpu.memory_space<vmem>>, vector<32x24xbf16>
    %cst_11 = arith.constant dense<0.000000e+00> : vector<2x24xf32>
    %16 = tpu.matmul %14, %15, %cst_11 {dimension_numbers = #tpu.dot_dimension_numbers<[1], [0], [0], [1], [0, 0, 1, 1], [], []>} : vector<2x32xbf16>, vector<32x24xbf16>, vector<2x24xf32> -> vector<2x24xf32>
    %17 = arith.negf %16 : vector<2x24xf32>
    %18 = math.exp %17 : vector<2x24xf32>
    %cst_12 = arith.constant 1.000000e+00 : f32
    %19 = vector.broadcast %cst_12 : f32 to vector<2x24xf32>
    %20 = arith.addf %19, %18 : vector<2x24xf32>
    %21 = arith.divf %19, %20 : vector<2x24xf32>
    %22 = arith.mulf %16, %21 : vector<2x24xf32>
    %23 = arith.truncf %22 : vector<2x24xf32> to vector<2x24xbf16>
    %c0_13 = arith.constant 0 : index
    %c0_14 = arith.constant 0 : index
    %24 = vector.load %arg5[%c0_13, %c0_14] : memref<24x8xbf16, #tpu.memory_space<vmem>>, vector<24x8xbf16>
    %cst_15 = arith.constant dense<0.000000e+00> : vector<2x8xf32>
    %25 = tpu.matmul %23, %24, %cst_15 {dimension_numbers = #tpu.dot_dimension_numbers<[1], [0], [0], [1], [0, 0, 1, 1], [], []>} : vector<2x24xbf16>, vector<24x8xbf16>, vector<2x8xf32> -> vector<2x8xf32>
    %c0_16 = arith.constant 0 : index
    %c0_17 = arith.constant 0 : index
    %26 = vector.load %arg6[%c0_16, %c0_17] : memref<1x8xf32, #tpu.memory_space<vmem>>, vector<1x8xf32>
    %27 = vector.broadcast %26 : vector<1x8xf32> to vector<2x8xf32>
    %28 = arith.addf %25, %27 : vector<2x8xf32>
    %29 = arith.negf %28 : vector<2x8xf32>
    %30 = math.exp %29 : vector<2x8xf32>
    %cst_18 = arith.constant 1.000000e+00 : f32
    %31 = vector.broadcast %cst_18 : f32 to vector<2x8xf32>
    %32 = arith.addf %31, %30 : vector<2x8xf32>
    %33 = arith.divf %31, %32 : vector<2x8xf32>
    %c0_19 = arith.constant 0 : index
    %c0_20 = arith.constant 0 : index
    %34 = vector.load %arg7[%c0_19, %c0_20] : memref<2x8xf32, #tpu.memory_space<vmem>>, vector<2x8xf32>
    tpu.vector_store %arg7[%c0_19, %c0_20], %33 {strides = array<i32>} : memref<2x8xf32, #tpu.memory_space<vmem>>, vector<2x8xf32>,
    return
  }
}

</mosaic_0001>

<bundles_post_ra>
// kernel: forward_packed.1
= control target key start
LH: loop header
LB: loop body
LE: loop exit
PB: predicated region body
PF: predicated region fallthrough
CT: control target
= control target key end

     0   :  { %vm376_vm0 = vcmask 1041408   ;;  %vm279_vm1 = vcmask 293888   ;;  %s2876_s0 = inlined_call_operand.vmem [shape: bf16[512,36], index: 0, kind: input, shape index: {}]   ;;  %s2877_s1 = inlined_call_operand.vmem [shape: bf16[36,32], index: 1, kind: input, shape index: {}]   ;;  %s2878_s2 = inlined_call_operand.vmem [shape: f32[1,32], index: 2, kind: input, shape index: {}]   ;;  %s2879_s3 = inlined_call_operand.vmem [shape: f32[2,512], index: 3, kind: input, shape index: {}]   ;;  %s2880_s4 = inlined_call_operand.vmem [shape: bf16[32,24], index: 4, kind: input, shape index: {}]   ;;  %s2881_s5 = inlined_call_operand.vmem [shape: bf16[24,8], index: 5, kind: input, shape index: {}]   ;;  %s2882_s6 = inlined_call_operand.vmem [shape: f32[1,8], index: 6, kind: input, shape index: {}]   ;;  %s2883_s7 = inlined_call_operand.hbm [shape: f32[2,8], index: 7, kind: output, shape index: {}]  }
   0x1   :  { %v1788_v0 = vld [vmem:[%s2877_s1 + $0x10] ss:$0 sps:$4 sm:$0x33]   ;;  %v1789_v1 = vld [vmem:[%s2877_s1 + $0x8] sm:$0xff]   ;;  %v1791_v3 = vld [vmem:[%s2876_s0] sm:$0xff]  }
   0x2   :  { %1782 = vmatprep.subr.msk.bf16.mxu0 %vm376_vm0, %v1788_v0  ;;  %v378_v2 = vsel %vm376_vm0, %v1788_v0, 0  ;;  %1783 = vmatprep.subr.msk.bf16.mxu1 %vm376_vm0, %v1788_v0  ;;  %v1790_v4 = vld [vmem:[%s2877_s1] sm:$0xff]   ;;  %v1792_v5 = vld [vmem:[%s2876_s0 + $0x8] sm:$0xff]   ;;  %v1793_v6 = vld [vmem:[%s2876_s0 + $0x10] sm:$0xff]  }
   0x3   :  { %1691 = vmatpush3.bf16.msra.mxu0 %v378_v2  ;;  %1779 = vmatpush3.bf16.msra.mxu1 %v378_v2  ;;  %v1799_v7 = vld [vmem:[%s2876_s0 + $0xc0] sm:$0xff]   ;;  %v1800_v8 = vld [vmem:[%s2876_s0 + $0xc8] sm:$0xff]   ;;  %v1803_v9 = vld [vmem:[%s2876_s0 + $0xd0] sm:$0xff]  }
   0x4   :  { %1692 = vmatprep.subr.bf16.mxu0 %v1789_v1  ;;  %1777 = vmatprep.subr.bf16.mxu1 %v1789_v1  ;;  %v1794_v10 = vld [vmem:[%s2876_s0 + $0x18] sm:$0xff]   ;;  %v1795_v11 = vld [vmem:[%s2876_s0 + $0x20] sm:$0xff]   ;;  %v1796_v14 = vld [vmem:[%s2876_s0 + $0x28] sm:$0xff]  }
   0x5   :  { %1696 = vmatprep.mubr.msk.bf16.mxu0 %vm279_vm1, %v1791_v3  ;;  %1744 = vmatprep.mubr.msk.bf16.mxu1 %vm279_vm1, %v1799_v7  ;;  %v1804_v12 = vld [vmem:[%s2876_s0 + $0xd8] sm:$0xff]   ;;  %v1807_v13 = vld [vmem:[%s2876_s0 + $0xe0] sm:$0xff]   ;;  %v1797_v15 = vld [vmem:[%s2876_s0 + $0x30] sm:$0xff]  }
   0x6   :  { %v1808_v16 = vld [vmem:[%s2876_s0 + $0xe8] sm:$0xff]   ;;  %v1811_v17 = vld [vmem:[%s2876_s0 + $0xf0] sm:$0xff]   ;;  %v1798_v18 = vld [vmem:[%s2876_s0 + $0x38] sm:$0xff]  }
   0x7   :  { %1693 = vmatpush3.bf16.msra.mxu0 %v1789_v1  ;;  %1780 = vmatpush3.bf16.msra.mxu1 %v1789_v1  ;;  %v1801_v19 = vld [vmem:[%s2876_s0 + $0x40] sm:$0xff]   ;;  %v1812_v20 = vld [vmem:[%s2876_s0 + $0xf8] sm:$0xff]  }
   0x8   :  { %1694 = vmatprep.subr.bf16.mxu0 %v1790_v4  ;;  %1778 = vmatprep.subr.bf16.mxu1 %v1790_v4 }
   0xb   :  { %1695 = vmatpush3.bf16.msra.mxu0 %v1790_v4  ;;  %1781 = vmatpush3.bf16.msra.mxu1 %v1790_v4 }
   0xe   :  { %1697 = vmatmul.mubr.msk.bf16.vlgmr.msra.gmra.mxu0 %vm279_vm1, %v1792_v5  ;;  %1745 = vmatmul.mubr.msk.bf16.vlgmr.msra.gmra.mxu1 %vm279_vm1, %v1800_v8 }
   0xf   :  { %1700 = vmatprep.mubr.msk.bf16.mxu0 %vm279_vm1, %v1793_v6  ;;  %1748 = vmatprep.mubr.msk.bf16.mxu1 %vm279_vm1, %v1803_v9 }
  0x16   :  { %1701 = vmatmul.mubr.msk.bf16.gmra.mxu0 %vm279_vm1, %v1794_v10  ;;  %1749 = vmatmul.mubr.msk.bf16.gmra.mxu1 %vm279_vm1, %v1804_v12 }
  0x17   :  { %1704 = vmatprep.mubr.msk.bf16.mxu0 %vm279_vm1, %v1795_v11  ;;  %1752 = vmatprep.mubr.msk.bf16.mxu1 %vm279_vm1, %v1807_v13 }
  0x1e   :  { %1705 = vmatmul.mubr.msk.bf16.gmra.mxu0 %vm279_vm1, %v1796_v14  ;;  %1753 = vmatmul.mubr.msk.bf16.gmra.mxu1 %vm279_vm1, %v1808_v16 }
  0x1f   :  { %1708 = vmatprep.mubr.msk.bf16.mxu0 %vm279_vm1, %v1797_v15  ;;  %1756 = vmatprep.mubr.msk.bf16.mxu1 %vm279_vm1, %v1811_v17 }
  0x20   :  { %12 = vsyncpa [#allocation3], 0  ;;  %v1802_v21 = vld [vmem:[%s2876_s0 + $0x48] sm:$0xff]   ;;  %v1805_v22 = vld [vmem:[%s2876_s0 + $0x50] sm:$0xff]   ;;  %v2114_v54 = vmov 1983009808   ;;  %v1123_v58 = vlaneseq }
  0x21   :  { %v1806_v23 = vld [vmem:[%s2876_s0 + $0x58] sm:$0xff]   ;;  %v1809_v24 = vld [vmem:[%s2876_s0 + $0x60] sm:$0xff]   ;;  %v1810_v25 = vld [vmem:[%s2876_s0 + $0x68] sm:$0xff]   ;;  %v1121_v55 = vunpack.c.l.s4 %v2114_v54  ;;  %vm2116_vm2 = vmmov 0   ;;  %vm1297_vm3 = vcmask 261120   ;;  %vm1372_vm4 = vcmask 1043456  }
  0x22   :  { %v1813_v26 = vld [vmem:[%s2876_s0 + $0x70] sm:$0xff]   ;;  %v1814_v27 = vld [vmem:[%s2876_s0 + $0x78] sm:$0xff]   ;;  %v1815_v28 = vld [vmem:[%s2876_s0 + $0x80] sm:$0xff]   ;;  %v1124_v2 = vshrl.u32 %v1123_v58, 7  ;;  %vm1368_vm5 = vcmask 195584   ;;  %vm1422_vm6 = vcmask 58368  }
  0x23   :  { %v1816_v29 = vld [vmem:[%s2876_s0 + $0x88] sm:$0xff]   ;;  %v1817_v30 = vld [vmem:[%s2876_s0 + $0x90] sm:$0xff]   ;;  %v1818_v31 = vld [vmem:[%s2876_s0 + $0x98] sm:$0xff]   ;;  %v1122_v62 = vunpack.c.0.s8 %v1121_v55 }
  0x24   :  { %v1819_v32 = vld [vmem:[%s2876_s0 + $0xa0] sm:$0xff]   ;;  %v1820_v33 = vld [vmem:[%s2876_s0 + $0xa8] sm:$0xff]   ;;  %v1821_v34 = vld [vmem:[%s2876_s0 + $0xb0] sm:$0xff]  }
  0x25   :  { %v1822_v35 = vld [vmem:[%s2876_s0 + $0xb8] sm:$0xff]   ;;  %v2312_v56 = vld [vmem:[%s2878_s2] ss:$0 sm:$0xff]  ;;  %v2343_v9 = vsub.s32 %v1122_v62, %v1124_v2 }
  0x26   :  { %1709 = vmatmul.mubr.msk.bf16.gmra.mxu0 %vm279_vm1, %v1798_v18  ;;  %1757 = vmatmul.mubr.msk.bf16.gmra.mxu1 %vm279_vm1, %v1812_v20  ;;  %v2335_v5 = vld [vmem:[%s2879_s3] sm:$0xff] }
  0x27   :  { %1712 = vmatprep.mubr.msk.bf16.mxu0 %vm279_vm1, %v1801_v19  ;;  %v2357_v15 = vrot.slane %v2335_v5, %v2343_v9 }
  0x29   :  { %2925 = vst [vmem:[#allocation12_spill] sm:$0xff] %v2357_v15 }
  0x2e   :  { %1713 = vmatmul.mubr.msk.bf16.gmra.mxu0 %vm279_vm1, %v1802_v21 }
  0x2f   :  { %1716 = vmatprep.mubr.msk.bf16.mxu0 %vm279_vm1, %v1805_v22  ;;  %v1134_v22 = vcombine.high %v2357_v15, %v2357_v15 }
  0x31   :  { %1204 = vmatprep.mubr.f32.mxu1 %v1134_v22 }
  0x36   :  { %1717 = vmatmul.mubr.msk.bf16.gmra.mxu0 %vm279_vm1, %v1806_v23 }
  0x37   :  { %1720 = vmatprep.mubr.msk.bf16.mxu0 %vm279_vm1, %v1809_v24 }
  0x3e   :  { %1721 = vmatmul.mubr.msk.bf16.gmra.mxu0 %vm279_vm1, %v1810_v25 }
  0x3f   :  { %1724 = vmatprep.mubr.msk.bf16.mxu0 %vm279_vm1, %v1813_v26 }
  0x46   :  { %1725 = vmatmul.mubr.msk.bf16.gmra.mxu0 %vm279_vm1, %v1814_v27 }
  0x47   :  { %1728 = vmatprep.mubr.msk.bf16.mxu0 %vm279_vm1, %v1815_v28 }
  0x4e   :  { %1729 = vmatmul.mubr.msk.bf16.gmra.mxu0 %vm279_vm1, %v1816_v29 }
  0x4f   :  { %1732 = vmatprep.mubr.msk.bf16.mxu0 %vm279_vm1, %v1817_v30 }
  0x56   :  { %1733 = vmatmul.mubr.msk.bf16.gmra.mxu0 %vm279_vm1, %v1818_v31 }
  0x57   :  { %1736 = vmatprep.mubr.msk.bf16.mxu0 %vm279_vm1, %v1819_v32 }
  0x5e   :  { %1737 = vmatmul.mubr.msk.bf16.gmra.mxu0 %vm279_vm1, %v1820_v33 }
  0x5f   :  { %1740 = vmatprep.mubr.msk.bf16.mxu0 %vm279_vm1, %v1821_v34 }
  0x66   :  { %1741 = vmatmul.mubr.msk.bf16.gmra.mxu0 %vm279_vm1, %v1822_v35 }
  0xce   :  { %v1698_v36 = vpop.f32.mrf.mxu0  ;;  %v1746_v49 = vpop.f32.mrf.mxu1 }
  0xcf   :  { %v2317_v60 = vadd.f32 %v1698_v36, %v2312_v56  ;;  %v2322_v63 = vadd.f32 %v1746_v49, %v2312_v56 }
  0xd0   :  { %v414_v37 = vpop.f32.mrf.mxu0  ;;  %v606_v52 = vpop.f32.mrf.mxu1 }
  0xd1   :  { %2918 = vst [vmem:[#allocation5_spill] sm:$0xff] %v2317_v60  ;;  %2919 = vst [vmem:[#allocation6_spill] sm:$0xff] %v2322_v63  ;;  %v2325_v0 = vadd.f32 %v2312_v56, %v414_v37  ;;  %v2330_v3 = vadd.f32 %v2312_v56, %v606_v52  ;;  %v1508_v6 = vmul.f32 -1.442695, %v2317_v60  ;;  %v1556_v10 = vmul.f32 -1.442695, %v2322_v63 }
  0xd2   :  { %v1699_v38 = vpop.f32.mrf.mxu0  ;;  %v1747_v59 = vpop.f32.mrf.mxu1 }
  0xd3   :  { %2920 = vst [vmem:[#allocation7_spill] sm:$0xff] %v2325_v0  ;;  %2921 = vst [vmem:[#allocation8_spill] sm:$0xff] %v2330_v3  ;;  %v2339_v7 = vadd.f32 %v1699_v38, %v2312_v56  ;;  %v2347_v11 = vadd.f32 %v1747_v59, %v2312_v56  ;;  %v1506_v12 = vmul.f32 -1.442695, %v2325_v0  ;;  %v1554_v16 = vmul.f32 -1.442695, %v2330_v3 }
  0xd4   :  { %v417_v39 = vpop.f32.mrf.mxu0  ;;  %v609_v4 = vpop.f32.mrf.mxu1  ;;  %1828 = vpow2.f32 %v1508_v6 }
  0xd5   :  { %2922 = vst [vmem:[#allocation9_spill] sm:$0xff] %v2339_v7  ;;  %2923 = vst [vmem:[#allocation10_spill] sm:$0xff] %v2347_v11  ;;  %v2351_v13 = vadd.f32 %v2312_v56, %v417_v39  ;;  %v2361_v17 = vadd.f32 %v2312_v56, %v609_v4  ;;  %v1509_v19 = vmul.f32 -1.442695, %v2339_v7  ;;  %1830 = vpow2.f32 %v1556_v10 }
  0xd6   :  { %v1702_v40 = vpop.f32.mrf.mxu0  ;;  %v1750_v18 = vpop.f32.mrf.mxu1  ;;  %v1557_v23 = vmul.f32 -1.442695, %v2347_v11  ;;  %1832 = vpow2.f32 %v1506_v12 }
  0xd7   :  { %2924 = vst [vmem:[#allocation11_spill] sm:$0xff] %v2351_v13  ;;  %2926 = vst [vmem:[#allocation13_spill] sm:$0xff] %v2361_v17  ;;  %v2365_v20 = vadd.f32 %v1702_v40, %v2312_v56  ;;  %v2373_v24 = vadd.f32 %v1750_v18, %v2312_v56  ;;  %v1507_v25 = vmul.f32 -1.442695, %v2351_v13  ;;  %1834 = vpow2.f32 %v1554_v16 }
  0xd8   :  { %v430_v41 = vpop.f32.mrf.mxu0  ;;  %v1555_v29 = vmul.f32 -1.442695, %v2361_v17  ;;  %v622_v30 = vpop.f32.mrf.mxu1  ;;  %1836 = vpow2.f32 %v1509_v19 }
  0xd9   :  { %2927 = vst [vmem:[#allocation14_spill] sm:$0xff] %v2365_v20  ;;  %2928 = vst [vmem:[#allocation15_spill] sm:$0xff] %v2373_v24  ;;  %v2377_v26 = vadd.f32 %v2312_v56, %v430_v41  ;;  %v1512_v31 = vmul.f32 -1.442695, %v2365_v20  ;;  %1838 = vpow2.f32 %v1557_v23  ;;  %v1560_v35 = vmul.f32 -1.442695, %v2373_v24 }
  0xda   :  { %v1703_v42 = vpop.f32.mrf.mxu0  ;;  %1840 = vpow2.f32 %v1507_v25  ;;  %v1751_v41 = vpop.f32.mrf.mxu1  ;;  %v2416_v49 = vadd.f32 %v2312_v56, %v622_v30 }
  0xdb   :  { %2929 = vst [vmem:[#allocation16_spill] sm:$0xff] %v2377_v26  ;;  %v2382_v28 = vadd.f32 %v1703_v42, %v2312_v56  ;;  %v1510_v36 = vmul.f32 -1.442695, %v2377_v26  ;;  %1842 = vpow2.f32 %v1555_v29  ;;  %v2432_v62 = vadd.f32 %v1751_v41, %v2312_v56 }
  0xdc   :  { %v433_v43 = vpop.f32.mrf.mxu0  ;;  %1844 = vpow2.f32 %v1512_v31  ;;  %2931 = vst [vmem:[#allocation18_spill] sm:$0xff] %v2416_v49  ;;  %v625_v58 = vpop.f32.mrf.mxu1 }
  0xdd   :  { %v2387_v32 = vadd.f32 %v2312_v56, %v433_v43  ;;  %v1513_v39 = vmul.f32 -1.442695, %v2382_v28  ;;  %1846 = vpow2.f32 %v1560_v35  ;;  %2932 = vst [vmem:[#allocation19_spill] sm:$0xff] %v2432_v62  ;;  %v2447_v16 = vadd.f32 %v2312_v56, %v625_v58 }
  0xde   :  { %v1706_v44 = vpop.f32.mrf.mxu0  ;;  %1848 = vpow2.f32 %v1510_v36  ;;  %v1561_v25 = vmul.f32 -1.442695, %v2432_v62 }
  0xdf   :  { %2930 = vst [vmem:[#allocation17_spill] sm:$0xff] %v2387_v32  ;;  %v2392_v34 = vadd.f32 %v1706_v44, %v2312_v56  ;;  %v1511_v42 = vmul.f32 -1.442695, %v2387_v32  ;;  %1850 = vpow2.f32 %v1513_v39  ;;  %2934 = vst [vmem:[#allocation21_spill] sm:$0xff] %v2447_v16  ;;  %v1559_v35 = vmul.f32 -1.442695, %v2447_v16 }
  0xe0   :  { %v2295_v45 = vpop.f32.mrf.mxu0 }
  0xe1   :  { %v2398_v37 = vadd.f32 %v2312_v56, %v2295_v45  ;;  %v1516_v45 = vmul.f32 -1.442695, %v2392_v34  ;;  %1852 = vpow2.f32 %v1511_v42  ;;  %v1829_v4 = vpop.eup %1828 }
  0xe2   :  { %v2297_v46 = vpop.f32.mrf.mxu0  ;;  %v2443_v10 = vpop.eup %1830 }
  0xe3   :  { %v2405_v40 = vadd.f32 %v2297_v46, %v2312_v56  ;;  %v1514_v46 = vmul.f32 -1.442695, %v2398_v37  ;;  %1854 = vpow2.f32 %v1516_v45  ;;  %2933 = vst [vmem:[#allocation20_spill] sm:$0xff] %v2443_v10  ;;  %v1833_v19 = vpop.eup %1832  ;;  %v863_v45 = vadd.f32 1.0, %v1829_v4 }
  0xe4   :  { %v2299_v47 = vpop.f32.mrf.mxu0  ;;  %v2459_v23 = vpop.eup %1834  ;;  %v861_v58 = vadd.f32 1.0, %v1833_v19 }
  0xe5   :  { %v2410_v43 = vadd.f32 %v2312_v56, %v2299_v47  ;;  %v1517_v47 = vmul.f32 -1.442695, %v2405_v40  ;;  %1856 = vpow2.f32 %v1514_v46  ;;  %2936 = vst [vmem:[#allocation23_spill] sm:$0xff] %v2459_v23  ;;  %v1837_v30 = vpop.eup %1836  ;;  %v1754_v23 = vpop.f32.mrf.mxu1 }
  0xe6   :  { %v2301_v48 = vpop.f32.mrf.mxu0 }
  0xe7   :  { %v2421_v52 = vadd.f32 %v2301_v48, %v2312_v56  ;;  %v1515_v59 = vmul.f32 -1.442695, %v2410_v43  ;;  %v1119_v48 = vcombine.high %v2335_v5, %v2335_v5  ;;  %1858 = vpow2.f32 %v1517_v47 }
  0xe8   :  { %v2303_v50 = vpop.f32.mrf.mxu0 }
  0xe9   :  { %v2428_v55 = vadd.f32 %v2312_v56, %v2303_v50  ;;  %v1558_v50 = vmul.f32 -1.442695, %v2416_v49  ;;  %v1520_v12 = vmul.f32 -1.442695, %v2421_v52  ;;  %v2452_v5 = vrot.slane %v1119_v48, %v2343_v9  ;;  %v2465_v9 = vpop.eup %1838 }
  0xea   :  { %v2305_v51 = vpop.f32.mrf.mxu0  ;;  %1860 = vpow2.f32 %v1515_v59  ;;  %2937 = vst [vmem:[#allocation24_spill] sm:$0xff] %v2465_v9  ;;  %v864_v48 = vadd.f32 1.0, %v1837_v30 }
  0xeb   :  { %v2440_v6 = vadd.f32 %v2305_v51, %v2312_v56  ;;  %2935 = vst [vmem:[#allocation22_spill] sm:$0xff] %v2452_v5  ;;  %v1518_v51 = vmul.f32 -1.442695, %v2428_v55  ;;  %1862 = vpow2.f32 %v1558_v50 }
  0xec   :  { %v2307_v53 = vpop.f32.mrf.mxu0  ;;  %1864 = vpow2.f32 %v1520_v12 }
  0xed   :  { %v2457_v22 = vadd.f32 %v2312_v56, %v2307_v53  ;;  %v1521_v31 = vmul.f32 -1.442695, %v2440_v6  ;;  %v1841_v53 = vpop.eup %1840  ;;  %1866 = vpow2.f32 %v1518_v51 }
  0xee   :  { %v2314_v57 = vpop.f32.mrf.mxu0  ;;  %v2475_v42 = vpop.eup %1842  ;;  %1868 = vpow2.f32 %v1561_v25  ;;  %v862_v3 = vadd.f32 1.0, %v1841_v53 }
  0xef   :  { %v1519_v39 = vmul.f32 -1.442695, %v2457_v22  ;;  %v2473_v41 = vadd.f32 %v2314_v57, %v2312_v56  ;;  %2939 = vst [vmem:[#allocation26_spill] sm:$0xff] %v2475_v42  ;;  %v1845_v47 = vpop.eup %1844  ;;  %1870 = vpow2.f32 %v1521_v31 }
  0xf0   :  { %v2319_v61 = vpop.f32.mrf.mxu0  ;;  %v2479_v59 = vpop.eup %1846  ;;  %1872 = vpow2.f32 %v1559_v35  ;;  %v867_v17 = vadd.f32 1.0, %v1845_v47 }
  0xf1   :  { %2938 = vst [vmem:[#allocation25_spill] sm:$0xff] %v2473_v41  ;;  %2940 = vst [vmem:[#allocation27_spill] sm:$0xff] %v2479_v59  ;;  %v1849_v12 = vpop.eup %1848  ;;  %1874 = vpow2.f32 %v1519_v39  ;;  %v1524_v57 = vmul.f32 -1.442695, %v2473_v41 }
  0xf2   :  { %v2327_v1 = vpop.f32.mrf.mxu0  ;;  %v1851_v51 = vpop.eup %1850  ;;  %1876 = vrcp.f32 %v863_v45  ;;  %v865_v31 = vadd.f32 1.0, %v1849_v12 }
  0xf3   :  { %v1853_v25 = vpop.eup %1852  ;;  %1878 = vrcp.f32 %v861_v58  ;;  %v868_v35 = vadd.f32 1.0, %v1851_v51  ;;  %v2492_v58 = vadd.f32 %v2312_v56, %v2319_v61 }
  0xf4   :  { %v2341_v8 = vpop.f32.mrf.mxu0  ;;  %v1855_v19 = vpop.eup %1854  ;;  %1880 = vrcp.f32 %v864_v48  ;;  %v866_v39 = vadd.f32 1.0, %v1853_v25 }
  0xf5   :  { %v1857_v30 = vpop.eup %1856  ;;  %1882 = vpow2.f32 %v1524_v57  ;;  %v871_v53 = vadd.f32 1.0, %v1855_v19  ;;  %2942 = vst [vmem:[#allocation29_spill] sm:$0xff] %v2492_v58 }
  0xf6   :  { %v2353_v14 = vpop.f32.mrf.mxu0  ;;  %v1859_v11 = vpop.eup %1858  ;;  %1884 = vrcp.f32 %v862_v3  ;;  %v869_v48 = vadd.f32 1.0, %v1857_v30 }
  0xf7   :  { %v1861_v45 = vpop.eup %1860  ;;  %1886 = vrcp.f32 %v867_v17  ;;  %v872_v57 = vadd.f32 1.0, %v1859_v11  ;;  %v2500_v17 = vadd.f32 %v2327_v1, %v2312_v56  ;;  %v2509_v11 = vadd.f32 %v2312_v56, %v2341_v8 }
  0xf8   :  { %v2367_v21 = vpop.f32.mrf.mxu0  ;;  %v2494_v47 = vpop.eup %1862  ;;  %1888 = vrcp.f32 %v865_v31  ;;  %v870_v25 = vadd.f32 1.0, %v1861_v45  ;;  %v1522_v31 = vmul.f32 -1.442695, %v2492_v58 }
  0xf9   :  { %2943 = vst [vmem:[#allocation30_spill] sm:$0xff] %v2494_v47  ;;  %v1865_v51 = vpop.eup %1864  ;;  %1890 = vrcp.f32 %v868_v35  ;;  %2944 = vst [vmem:[#allocation31_spill] sm:$0xff] %v2500_v17  ;;  %v1525_v45 = vmul.f32 -1.442695, %v2500_v17 }
  0xfa   :  { %v2379_v27 = vpop.f32.mrf.mxu0  ;;  %v1867_v3 = vpop.eup %1866  ;;  %1892 = vrcp.f32 %v866_v39  ;;  %v875_v16 = vadd.f32 1.0, %v1865_v51  ;;  %2946 = vst [vmem:[#allocation33_spill] sm:$0xff] %v2509_v11 }
  0xfb   :  { %v2504_v61 = vpop.eup %1868  ;;  %1894 = vrcp.f32 %v871_v53  ;;  %v873_v39 = vadd.f32 1.0, %v1867_v3  ;;  %v2516_v53 = vadd.f32 %v2353_v14, %v2312_v56  ;;  %v1523_v3 = vmul.f32 -1.442695, %v2509_v11 }
  0xfc   :  { %v2389_v33 = vpop.f32.mrf.mxu0  ;;  %2945 = vst [vmem:[#allocation32_spill] sm:$0xff] %v2504_v61  ;;  %v1871_v30 = vpop.eup %1870  ;;  %1896 = vrcp.f32 %v869_v48 }
  0xfd   :  { %v2511_v35 = vpop.eup %1872  ;;  %1898 = vrcp.f32 %v872_v57  ;;  %v876_v51 = vadd.f32 1.0, %v1871_v30  ;;  %v2612_v13 = vadd.f32 %v2312_v56, %v2389_v33 }
  0xfe   :  { %v2400_v38 = vpop.f32.mrf.mxu0  ;;  %2947 = vst [vmem:[#allocation34_spill] sm:$0xff] %v2511_v35  ;;  %v1875_v1 = vpop.eup %1874  ;;  %1900 = vrcp.f32 %v870_v25  ;;  %v2531_v25 = vadd.f32 %v2312_v56, %v2367_v21 }
  0xff   :  { %v2520_v48 = vpop.eup %1876  ;;  %1902 = vpow2.f32 %v1522_v31  ;;  %v874_v62 = vadd.f32 1.0, %v1875_v1  ;;  %v1528_v31 = vmul.f32 -1.442695, %v2516_v53  ;;  %2958 = vst [vmem:[#allocation45_spill] sm:$0xff] %v2612_v13 }
 0x100   :  { %v2412_v44 = vpop.f32.mrf.mxu0  ;;  %2948 = vst [vmem:[#allocation35_spill] sm:$0xff] %v2520_v48  ;;  %v2526_v57 = vpop.eup %1878  ;;  %1904 = vrcp.f32 %v875_v16  ;;  %2950 = vst [vmem:[#allocation37_spill] sm:$0xff] %v2531_v25  ;;  %v1526_v1 = vmul.f32 -1.442695, %v2531_v25 }
 0x101   :  { %2949 = vst [vmem:[#allocation36_spill] sm:$0xff] %v2526_v57  ;;  %v2533_v14 = vpop.eup %1880  ;;  %1906 = vrcp.f32 %v873_v39 }
 0x102   :  { %v2423_v54 = vpop.f32.mrf.mxu0  ;;  %2951 = vst [vmem:[#allocation38_spill] sm:$0xff] %v2533_v14  ;;  %v1883_v30 = vpop.eup %1882  ;;  %1908 = vpow2.f32 %v1525_v45 }
 0x103   :  { %v2541_v16 = vpop.eup %1884  ;;  %1910 = vrcp.f32 %v876_v51  ;;  %v879_v9 = vadd.f32 1.0, %v1883_v30  ;;  %v638_v51 = vpop.f32.mrf.mxu1  ;;  %v2566_v47 = vadd.f32 %v2423_v54, %v2312_v56 }
 0x104   :  { %v2434_v2 = vpop.f32.mrf.mxu0  ;;  %2953 = vst [vmem:[#allocation40_spill] sm:$0xff] %v2541_v16  ;;  %v2548_v39 = vpop.eup %1886  ;;  %1912 = vpow2.f32 %v1523_v3  ;;  %v2587_v5 = vadd.f32 %v2312_v56, %v638_v51  ;;  %v2605_v16 = vadd.f32 %v2312_v56, %v2412_v44 }
 0x105   :  { %2954 = vst [vmem:[#allocation41_spill] sm:$0xff] %v2548_v39  ;;  %v2555_v45 = vpop.eup %1888  ;;  %1914 = vrcp.f32 %v874_v62  ;;  %v2574_v62 = vadd.f32 %v2379_v27, %v2312_v56  ;;  %v1755_v27 = vpop.f32.mrf.mxu1 }
 0x106   :  { %v2449_v18 = vpop.f32.mrf.mxu0  ;;  %2955 = vst [vmem:[#allocation42_spill] sm:$0xff] %v2555_v45  ;;  %1916 = vpow2.f32 %v1528_v31  ;;  %v2581_v31 = vadd.f32 %v2400_v38, %v2312_v56  ;;  %2957 = vst [vmem:[#allocation44_spill] sm:$0xff] %v2587_v5  ;;  %v2595_v38 = vadd.f32 %v2312_v56, %v2434_v2  ;;  %v1562_v2 = vmul.f32 -1.442695, %v2587_v5 }
 0x107   :  { %v2524_v8 = vadd.f32 %v2449_v18, %v2312_v56  ;;  %v2537_v18 = vadd.f32 %v1754_v23, %v2312_v56  ;;  %v641_v61 = vpop.f32.mrf.mxu1 }
 0x108   :  { %v2462_v29 = vpop.f32.mrf.mxu0  ;;  %v1532_v58 = vmul.f32 -1.442695, %v2581_v31  ;;  %v1531_v44 = vmul.f32 -1.442695, %v2595_v38  ;;  %v2625_v33 = vadd.f32 %v2312_v56, %v641_v61 }
 0x109   :  { %2952 = vst [vmem:[#allocation39_spill] sm:$0xff] %v2537_v18  ;;  %v1536_v21 = vmul.f32 -1.442695, %v2524_v8  ;;  %v2546_v10 = vadd.f32 %v2312_v56, %v2462_v29  ;;  %v2561_v29 = vpop.eup %1890  ;;  %v1564_v3 = vmul.f32 -1.442695, %v2537_v18 }
 0x10a   :  { %v2468_v36 = vpop.f32.mrf.mxu0  ;;  %v2570_v35 = vpop.eup %1892  ;;  %2960 = vst [vmem:[#allocation47_spill] sm:$0xff] %v2625_v33  ;;  %v1563_v45 = vmul.f32 -1.442695, %v2625_v33 }
 0x10b   :  { %v2553_v23 = vadd.f32 %v2468_v36, %v2312_v56  ;;  %2956 = vst [vmem:[#allocation43_spill] sm:$0xff] %v2570_v35  ;;  %1918 = vpow2.f32 %v1536_v21  ;;  %v2577_v30 = vpop.eup %1894 }
 0x10c   :  { %v2477_v46 = vpop.f32.mrf.mxu0  ;;  %1920 = vpow2.f32 %v1526_v1  ;;  %v2584_v18 = vpop.eup %1896  ;;  %v1533_v1 = vmul.f32 -1.442695, %v2566_v47 }
 0x10d   :  { %v2559_v15 = vadd.f32 %v2312_v56, %v2477_v46  ;;  %v1534_v46 = vmul.f32 -1.442695, %v2546_v10  ;;  %v1537_v54 = vmul.f32 -1.442695, %v2553_v23  ;;  %1922 = vrcp.f32 %v879_v9  ;;  %v2590_v57 = vpop.eup %1898 }
 0x10e   :  { %v2481_v50 = vpop.f32.mrf.mxu0  ;;  %1924 = vpow2.f32 %v1564_v3  ;;  %v2599_v59 = vpop.eup %1900  ;;  %v1529_v9 = vmul.f32 -1.442695, %v2574_v62 }
 0x10f   :  { %v1535_v21 = vmul.f32 -1.442695, %v2559_v15  ;;  %1926 = vpow2.f32 %v1534_v46  ;;  %v1903_v51 = vpop.eup %1902  ;;  %v2617_v46 = vadd.f32 %v1755_v27, %v2312_v56  ;;  %v1527_v27 = vmul.f32 -1.442695, %v2612_v13 }
 0x110   :  { %v2484_v4 = vpop.f32.mrf.mxu0  ;;  %1928 = vpow2.f32 %v1537_v54  ;;  %v2607_v3 = vpop.eup %1904  ;;  %v877_v60 = vadd.f32 1.0, %v1903_v51 }
 0x111   :  { %2941 = vst [vmem:[#allocation28_spill] sm:$0xff] %v2484_v4  ;;  %1930 = vpow2.f32 %v1535_v21  ;;  %v2614_v11 = vpop.eup %1906  ;;  %2959 = vst [vmem:[#allocation46_spill] sm:$0xff] %v2617_v46  ;;  %v1530_v21 = vmul.f32 -1.442695, %v2605_v16  ;;  %v1565_v7 = vmul.f32 -1.442695, %v2617_v46 }
 0x112   :  { %v2486_v63 = vpop.f32.mrf.mxu0  ;;  %1932 = vpow2.f32 %v1533_v1  ;;  %v1909_v54 = vpop.eup %1908 }
 0x113   :  { %1934 = vpow2.f32 %v1529_v9  ;;  %v2622_v5 = vpop.eup %1910  ;;  %v1758_v1 = vpop.f32.mrf.mxu1  ;;  %v880_v61 = vadd.f32 1.0, %v1909_v54 }
 0x114   :  { %v2488_v49 = vpop.f32.mrf.mxu0  ;;  %1936 = vpow2.f32 %v1532_v58  ;;  %v1913_v41 = vpop.eup %1912  ;;  %v2633_v51 = vadd.f32 %v1758_v1, %v2312_v56 }
 0x115   :  { %1938 = vpow2.f32 %v1562_v2  ;;  %v2629_v14 = vpop.eup %1914  ;;  %v878_v26 = vadd.f32 1.0, %v1913_v41  ;;  %v654_v1 = vpop.f32.mrf.mxu1 }
 0x116   :  { %v2496_v12 = vpop.f32.mrf.mxu0  ;;  %2961 = vst [vmem:[#allocation48_spill] sm:$0xff] %v2633_v51  ;;  %1940 = vpow2.f32 %v1531_v44  ;;  %v1917_v58 = vpop.eup %1916  ;;  %v1568_v46 = vmul.f32 -1.442695, %v2633_v51  ;;  %v2642_v32 = vadd.f32 %v2312_v56, %v654_v1 }
 0x117   :  { %1942 = vrcp.f32 %v877_v60 }
 0x118   :  { %v2502_v19 = vpop.f32.mrf.mxu0  ;;  %v1919_v17 = vpop.eup %1918  ;;  %1944 = vpow2.f32 %v1530_v21  ;;  %2963 = vst [vmem:[#allocation50_spill] sm:$0xff] %v2642_v32  ;;  %v883_v21 = vadd.f32 1.0, %v1917_v58  ;;  %v1566_v51 = vmul.f32 -1.442695, %v2642_v32 }
 0x119   :  { %v1921_v2 = vpop.eup %1920  ;;  %1946 = vpow2.f32 %v1527_v27  ;;  %v891_v60 = vadd.f32 1.0, %v1919_v17  ;;  %v1759_v27 = vpop.f32.mrf.mxu1 }
 0x11a   :  { %v2518_v24 = vpop.f32.mrf.mxu0  ;;  %v2638_v25 = vpop.eup %1922  ;;  %1948 = vpow2.f32 %v1565_v7  ;;  %v2646_v39 = vadd.f32 %v1759_v27, %v2312_v56 }
 0x11b   :  { %2962 = vst [vmem:[#allocation49_spill] sm:$0xff] %v2638_v25  ;;  %v1925_v44 = vpop.eup %1924  ;;  %1950 = vrcp.f32 %v880_v61  ;;  %v657_v4 = vpop.f32.mrf.mxu1 }
 0x11c   :  { %v2539_v42 = vpop.f32.mrf.mxu0  ;;  %v1927_v54 = vpop.eup %1926  ;;  %1952 = vpow2.f32 %v1563_v45  ;;  %2964 = vst [vmem:[#allocation51_spill] sm:$0xff] %v2646_v39  ;;  %v1569_v32 = vmul.f32 -1.442695, %v2646_v39 }
 0x11d   :  { %v1929_v33 = vpop.eup %1928  ;;  %1954 = vrcp.f32 %v878_v26  ;;  %v889_v17 = vadd.f32 1.0, %v1927_v54  ;;  %v881_v26 = vadd.f32 1.0, %v1921_v2 }
 0x11e   :  { %v2568_v36 = vpop.f32.mrf.mxu0  ;;  %v1931_v41 = vpop.eup %1930  ;;  %1956 = vpow2.f32 %v1568_v46  ;;  %v892_v25 = vadd.f32 1.0, %v1929_v33 }
 0x11f   :  { %v1933_v13 = vpop.eup %1932  ;;  %1958 = vrcp.f32 %v891_v60  ;;  %v890_v61 = vadd.f32 1.0, %v1931_v41 }
 0x120   :  { %v2597_v0 = vpop.f32.mrf.mxu0  ;;  %v1935_v1 = vpop.eup %1934  ;;  %1960 = vrcp.f32 %v892_v25  ;;  %v888_v46 = vadd.f32 1.0, %v1933_v13  ;;  %v919_v25 = vadd.f32 1.0, %v1925_v44 }
 0x121   :  { %v1937_v45 = vpop.eup %1936  ;;  %1962 = vrcp.f32 %v883_v21  ;;  %v2657_v21 = vadd.f32 %v2312_v56, %v657_v4  ;;  %v884_v39 = vadd.f32 1.0, %v1935_v1 }
 0x122   :  { %v2620_v48 = vpop.f32.mrf.mxu0  ;;  %v2648_v58 = vpop.eup %1938  ;;  %1964 = vrcp.f32 %v890_v61  ;;  %v887_v60 = vadd.f32 1.0, %v1937_v45 }
 0x123   :  { %v1941_v20 = vpop.eup %1940  ;;  %1966 = vpow2.f32 %v1566_v51  ;;  %2967 = vst [vmem:[#allocation54_spill] sm:$0xff] %v2657_v21 }
 0x124   :  { %v2635_v9 = vpop.f32.mrf.mxu0  ;;  %v2651_v27 = vpop.eup %1942  ;;  %1968 = vrcp.f32 %v889_v17  ;;  %v886_v13 = vadd.f32 1.0, %v1941_v20 }
 0x125   :  { %2965 = vst [vmem:[#allocation52_spill] sm:$0xff] %v2651_v27  ;;  %v1945_v41 = vpop.eup %1944  ;;  %1970 = vrcp.f32 %v881_v26  ;;  %v2678_v26 = vadd.f32 %v2620_v48, %v2312_v56 }
 0x126   :  { %v1742_v35 = vpop.f32.mrf.mxu0  ;;  %v1947_v2 = vpop.eup %1946  ;;  %1972 = vrcp.f32 %v888_v46  ;;  %v885_v44 = vadd.f32 1.0, %v1945_v41 }
 0x127   :  { %v2654_v54 = vadd.f32 %v1742_v35, %v2312_v56  ;;  %v1949_v61 = vpop.eup %1948  ;;  %1974 = vpow2.f32 %v1569_v32  ;;  %v1567_v32 = vmul.f32 -1.442695, %v2657_v21 }
 0x128   :  { %v590_v7 = vpop.f32.mrf.mxu0  ;;  %v2662_v17 = vpop.eup %1950  ;;  %1976 = vrcp.f32 %v887_v60 }
 0x129   :  { %2966 = vst [vmem:[#allocation53_spill] sm:$0xff] %v2654_v54  ;;  %v2660_v27 = vadd.f32 %v2312_v56, %v590_v7  ;;  %v2667_v45 = vpop.eup %1952  ;;  %1978 = vrcp.f32 %v919_v25  ;;  %v1552_v20 = vmul.f32 -1.442695, %v2654_v54  ;;  %v2684_v25 = vadd.f32 %v2568_v36, %v2312_v56 }
 0x12a   :  { %v1743_v33 = vpop.f32.mrf.mxu0  ;;  %v2673_v1 = vpop.eup %1954  ;;  %1980 = vrcp.f32 %v886_v13  ;;  %v2695_v54 = vadd.f32 %v2312_v56, %v2635_v9 }
 0x12b   :  { %2968 = vst [vmem:[#allocation55_spill] sm:$0xff] %v2660_v27  ;;  %v2665_v35 = vadd.f32 %v1743_v33, %v2312_v56  ;;  %v1957_v7 = vpop.eup %1956  ;;  %1982 = vrcp.f32 %v884_v39  ;;  %v1550_v46 = vmul.f32 -1.442695, %v2660_v27  ;;  %v882_v39 = vadd.f32 1.0, %v1947_v2 }
 0x12c   :  { %v593_v51 = vpop.f32.mrf.mxu0  ;;  %v1959_v33 = vpop.eup %1958  ;;  %1984 = vrcp.f32 %v885_v44  ;;  %v1068_v44 = vmul.f32 %v2622_v5, %v2440_v6  ;;  %v1549_v27 = vmul.f32 -1.442695, %v2678_v26  ;;  %v2703_v6 = vadd.f32 %v2312_v56, %v2597_v0 }
 0x12d   :  { %v2671_v4 = vadd.f32 %v2312_v56, %v593_v51  ;;  %v1553_v60 = vmul.f32 -1.442695, %v2665_v35  ;;  %v1961_v41 = vpop.eup %1960  ;;  %1986 = vpow2.f32 %v1552_v20  ;;  %v920_v20 = vadd.f32 1.0, %v1949_v61 }
 0x12e   :  { %v2687_v51 = vpop.eup %1962  ;;  %1988 = vpow2.f32 %v1567_v32  ;;  %v1084_v48 = vmul.f32 %v1961_v41, %v2553_v23  ;;  %v1067_v23 = vmul.f32 %v2607_v3, %v2421_v52  ;;  %v1548_v32 = vmul.f32 -1.442695, %v2684_v25 }
 0x12f   :  { %2969 = vst [vmem:[#allocation56_spill] sm:$0xff] %v2671_v4  ;;  %v1551_v13 = vmul.f32 -1.442695, %v2671_v4  ;;  %v1965_v21 = vpop.eup %1964  ;;  %1990 = vpow2.f32 %v1550_v46  ;;  %v1083_v4 = vmul.f32 %v1959_v33, %v2524_v8  ;;  %v923_v9 = vadd.f32 1.0, %v1957_v7 }
 0x130   :  { %v1967_v36 = vpop.eup %1966  ;;  %1992 = vpow2.f32 %v1553_v60  ;;  %1614 = vmatprep.subr.mxu1 %v1084_v48  ;;  %v1082_v8 = vmul.f32 %v1965_v21, %v2559_v15  ;;  %v2710_v61 = vadd.f32 %v2486_v63, %v2312_v56  ;;  %v1066_v3 = vmul.f32 %v2629_v14, %v2457_v22 }
 0x131   :  { %v1969_v2 = vpop.eup %1968  ;;  %1994 = vpow2.f32 %v1551_v13  ;;  %1615 = vmatpush3.msra.mxu1 %v1068_v44  ;;  %v2716_v0 = vadd.f32 %v2518_v24, %v2312_v56  ;;  %v1547_v46 = vmul.f32 -1.442695, %v2695_v54  ;;  %v921_v15 = vadd.f32 1.0, %v1967_v36 }
 0x132   :  { %v2705_v5 = vpop.eup %1970  ;;  %1996 = vrcp.f32 %v882_v39  ;;  %1616 = vmatprep.subr.mxu1 %v1083_v4  ;;  %v1081_v21 = vmul.f32 %v1969_v2, %v2546_v10  ;;  %v1065_v4 = vmul.f32 %v2614_v11, %v2428_v55  ;;  %v2724_v22 = vadd.f32 %v2496_v12, %v2312_v56 }
 0x133   :  { %v1973_v52 = vpop.eup %1972  ;;  %1998 = vpow2.f32 %v1549_v27  ;;  %1617 = vmatpush3.msra.mxu1 %v1067_v23  ;;  %v1546_v24 = vmul.f32 -1.442695, %v2703_v6  ;;  %v1541_v10 = vmul.f32 -1.442695, %v2710_v61  ;;  %v2733_v33 = vadd.f32 %v2312_v56, %v2502_v19 }
 0x134   :  { %v1975_v7 = vpop.eup %1974  ;;  %2000 = vrcp.f32 %v920_v20  ;;  %1618 = vmatprep.subr.mxu1 %v1082_v8  ;;  %v1080_v27 = vmul.f32 %v1973_v52, %v2566_v47  ;;  %v1064_v12 = vmul.f32 %v2590_v57, %v2405_v40  ;;  %v1545_v11 = vmul.f32 -1.442695, %v2716_v0 }
 0x135   :  { %v1977_v63 = vpop.eup %1976  ;;  %2002 = vpow2.f32 %v1548_v32  ;;  %1619 = vmatpush3.msra.mxu1 %v1066_v3  ;;  %v2740_v60 = vadd.f32 %v2312_v56, %v2539_v42  ;;  %v924_v13 = vadd.f32 1.0, %v1975_v7  ;;  %v1063_v39 = vmul.f32 %v2577_v30, %v2392_v34  ;;  %v2970_v3 = vld [vmem:[#allocation28_spill] sm:$0xff]  ;;  %v2971_v7 = vld [vmem:[#allocation14_spill] sm:$0xff] }
 0x136   :  { %v2727_v14 = vpop.eup %1978  ;;  %2004 = vrcp.f32 %v923_v9  ;;  %1620 = vmatprep.subr.mxu1 %v1081_v21  ;;  %v1079_v41 = vmul.f32 %v1977_v63, %v2581_v31  ;;  %v1544_v40 = vmul.f32 -1.442695, %v2724_v22  ;;  %v1542_v48 = vmul.f32 -1.442695, %v2733_v33  ;;  %v2973_v63 = vld [vmem:[#allocation45_spill] sm:$0xff] }
 0x137   :  { %v1981_v55 = vpop.eup %1980  ;;  %2006 = vpow2.f32 %v1547_v46  ;;  %1621 = vmatpush3.msra.mxu1 %v1065_v4  ;;  %v1062_v31 = vmul.f32 %v2599_v59, %v2410_v43  ;;  %v1543_v36 = vmul.f32 -1.442695, %v2740_v60  ;;  %v2754_v20 = vadd.f32 %v2481_v50, %v2312_v56 }
 0x138   :  { %v1983_v47 = vpop.eup %1982  ;;  %2008 = vrcp.f32 %v921_v15  ;;  %1622 = vmatprep.subr.mxu1 %v1080_v27  ;;  %v1078_v42 = vmul.f32 %v1981_v55, %v2595_v38  ;;  %v1061_v2 = vmul.f32 %v2584_v18, %v2398_v37  ;;  %v2760_v43 = vadd.f32 %v2312_v56, %v2488_v49  ;;  %v2972_v15 = vld [vmem:[#allocation41_spill] sm:$0xff] }
 0x139   :  { %v1985_v19 = vpop.eup %1984  ;;  %2010 = vpow2.f32 %v1546_v24  ;;  %1623 = vmatpush3.msra.mxu1 %v1064_v12  ;;  %v1060_v8 = vmul.f32 %v2561_v29, %v2382_v28  ;;  %v1075_v49 = vmul.f32 %v2687_v51, %v2516_v53  ;;  %v1540_v52 = vmul.f32 -1.442695, %v2754_v20  ;;  %v2975_v24 = vld [vmem:[#allocation43_spill] sm:$0xff]  ;;  %v2976_v12 = vld [vmem:[#allocation37_spill] sm:$0xff] }
 0x13a   :  { %v1987_v57 = vpop.eup %1986  ;;  %2012 = vpow2.f32 %v1541_v10  ;;  %1624 = vmatprep.subr.mxu1 %v1079_v41  ;;  %v1077_v30 = vmul.f32 %v1985_v19, %v2605_v16  ;;  %v1076_v16 = vmul.f32 %v1983_v47, %v2574_v62  ;;  %v2770_v62 = vadd.f32 %v2312_v56, %v2970_v3  ;;  %v2974_v56 = vld [vmem:[#allocation17_spill] sm:$0xff]  ;;  %v2978_v19 = vld [vmem:[#allocation42_spill] sm:$0xff] }
 0x13b   :  { %v1989_v44 = vpop.eup %1988  ;;  %2014 = vpow2.f32 %v1545_v11  ;;  %1625 = vmatpush3.msra.mxu1 %v1063_v39  ;;  %v907_v59 = vadd.f32 1.0, %v1987_v57  ;;  %v1059_v28 = vmul.f32 %v2972_v15, %v2971_v7  ;;  %v1539_v53 = vmul.f32 -1.442695, %v2760_v43  ;;  %v2988_v7 = vld [vmem:[#allocation11_spill] sm:$0xff] }
 0x13c   :  { %v1991_v34 = vpop.eup %1990  ;;  %2016 = vrcp.f32 %v924_v13  ;;  %1626 = vmatprep.subr.mxu1 %v1078_v42  ;;  %v922_v32 = vadd.f32 1.0, %v1989_v44  ;;  %v1058_v27 = vmul.f32 %v2975_v24, %v2974_v56  ;;  %v1073_v11 = vmul.f32 %v2705_v5, %v2976_v12  ;;  %v2977_v13 = vld [vmem:[#allocation16_spill] sm:$0xff]  ;;  %v2979_v42 = vld [vmem:[#allocation31_spill] sm:$0xff]  ;;  %v2995_v12 = vld [vmem:[#allocation22_spill] sm:$0xff] }
 0x13d   :  { %v1993_v38 = vpop.eup %1992  ;;  %2018 = vpow2.f32 %v1544_v40  ;;  %1627 = vmatpush3.msra.mxu1 %v1062_v31  ;;  %v905_v29 = vadd.f32 1.0, %v1991_v34  ;;  %v1538_v47 = vmul.f32 -1.442695, %v2770_v62  ;;  %v1057_v39 = vmul.f32 %v2978_v19, %v2977_v13  ;;  %v2980_v31 = vld [vmem:[#allocation9_spill] sm:$0xff]  ;;  %v2993_v24 = vld [vmem:[#allocation7_spill] sm:$0xff]  ;;  %v2996_v13 = vld [vmem:[#allocation34_spill] sm:$0xff] }
 0x13e   :  { %v1995_v23 = vpop.eup %1994  ;;  %2020 = vpow2.f32 %v1542_v48  ;;  %v908_v9 = vadd.f32 1.0, %v1993_v38  ;;  %1628 = vmatprep.subr.mxu1 %v1077_v30  ;;  %v1072_v48 = vmul.f32 %v2662_v17, %v2979_v42  ;;  %v918_v44 = vadd.f32 1.0, %v2667_v45  ;;  %v2984_v45 = vld [vmem:[#allocation5_spill] sm:$0xff] }
 0x13f   :  { %v1997_v50 = vpop.eup %1996  ;;  %2022 = vpow2.f32 %v1543_v36  ;;  %v906_v37 = vadd.f32 1.0, %v1995_v23  ;;  %1629 = vmatpush3.msra.mxu1 %v1061_v2  ;;  %v2981_v36 = vld [vmem:[#allocation38_spill] sm:$0xff]  ;;  %v2982_v2 = vld [vmem:[#allocation25_spill] sm:$0xff]  ;;  %v914_v19 = vadd.f32 1.0, %v2996_v13 }
 0x140   :  { %v1999_v18 = vpop.eup %1998  ;;  %2024 = vrcp.f32 %v908_v9  ;;  %1630 = vmatprep.subr.mxu1 %v1076_v16  ;;  %v1074_v4 = vmul.f32 %v1997_v50, %v2973_v63  ;;  %v1056_v34 = vmul.f32 %v2981_v36, %v2980_v31  ;;  %v917_v16 = vadd.f32 1.0, %v2648_v58  ;;  %v2989_v58 = vld [vmem:[#allocation40_spill] sm:$0xff]  ;;  %v2998_v31 = vld [vmem:[#allocation30_spill] sm:$0xff] }
 0x141   :  { %v2772_v46 = vpop.eup %2000  ;;  %2026 = vrcp.f32 %v907_v59  ;;  %1631 = vmatpush3.msra.mxu1 %v1060_v8  ;;  %v904_v10 = vadd.f32 1.0, %v1999_v18  ;;  %v2983_v59 = vld [vmem:[#allocation49_spill] sm:$0xff]  ;;  %v1054_v15 = vmul.f32 %v2989_v58, %v2988_v7  ;;  %v2991_v63 = vld [vmem:[#allocation52_spill] sm:$0xff]  ;;  %v913_v36 = vadd.f32 1.0, %v2998_v31 }
 0x142   :  { %v2003_v21 = vpop.eup %2002  ;;  %2028 = vrcp.f32 %v922_v32  ;;  %1632 = vmatprep.subr.mxu1 %v1075_v49  ;;  %v1071_v23 = vmul.f32 %v2983_v59, %v2982_v2  ;;  %v2985_v32 = vld [vmem:[#allocation35_spill] sm:$0xff]  ;;  %v2987_v49 = vld [vmem:[#allocation32_spill] sm:$0xff] }
 0x143   :  { %v2778_v51 = vpop.eup %2004  ;;  %2030 = vrcp.f32 %v906_v37  ;;  %1633 = vmatpush3.msra.mxu1 %v1059_v28  ;;  %v903_v40 = vadd.f32 1.0, %v2003_v21  ;;  %v1055_v9 = vmul.f32 %v2985_v32, %v2984_v45  ;;  %v2986_v37 = vld [vmem:[#allocation33_spill] sm:$0xff]  ;;  %v3003_v32 = vld [vmem:[#allocation54_spill] sm:$0xff] }
 0x144   :  { %v2007_v55 = vpop.eup %2006  ;;  %2032 = vpow2.f32 %v1540_v52  ;;  %1634 = vmatprep.subr.mxu1 %v1074_v4  ;;  %v1070_v18 = vmul.f32 %v2673_v1, %v2986_v37  ;;  %v916_v52 = vadd.f32 1.0, %v2987_v49  ;;  %v2990_v21 = vld [vmem:[#allocation29_spill] sm:$0xff]  ;;  %v3005_v49 = vld [vmem:[#allocation20_spill] sm:$0xff] }
 0x145   :  { %v2785_v41 = vpop.eup %2008  ;;  %2034 = vrcp.f32 %v905_v29  ;;  %1635 = vmatpush3.msra.mxu1 %v1058_v27  ;;  %v902_v30 = vadd.f32 1.0, %v2007_v55  ;;  %v1069_v4 = vmul.f32 %v2991_v63, %v2990_v21  ;;  %v2994_v27 = vld [vmem:[#allocation36_spill] sm:$0xff] }
 0x146   :  { %v2011_v57 = vpop.eup %2010  ;;  %2036 = vpow2.f32 %v1539_v53  ;;  %1636 = vmatprep.subr.mxu1 %v1073_v11  ;;  %v2992_v53 = vld [vmem:[#allocation27_spill] sm:$0xff]  ;;  %v1135_v11 = vcombine.high %v2995_v12, %v2995_v12 }
 0x147   :  { %v2792_v5 = vpop.eup %2012  ;;  %2038 = vrcp.f32 %v904_v10  ;;  %1637 = vmatpush3.msra.mxu1 %v1057_v39  ;;  %v901_v50 = vadd.f32 1.0, %v2011_v57  ;;  %v915_v56 = vadd.f32 1.0, %v2992_v53  ;;  %v1053_v10 = vmul.f32 %v2994_v27, %v2993_v24  ;;  %v2997_v39 = vld [vmem:[#allocation51_spill] sm:$0xff] }
 0x148   :  { %v2015_v38 = vpop.eup %2014  ;;  %2040 = vpow2.f32 %v1538_v47  ;;  %1638 = vmatprep.subr.mxu1 %v1072_v48  ;;  %v3010_v27 = vld [vmem:[#allocation23_spill] sm:$0xff] }
 0x149   :  { %v2017_v17 = vpop.eup %2016  ;;  %2042 = vrcp.f32 %v903_v40  ;;  %1639 = vmatpush3.msra.mxu1 %v1056_v34  ;;  %v900_v28 = vadd.f32 1.0, %v2015_v38  ;;  %v2999_v34 = vld [vmem:[#allocation48_spill] sm:$0xff] }
 0x14a   :  { %v2019_v8 = vpop.eup %2018  ;;  %2044 = vrcp.f32 %v918_v44  ;;  %1640 = vmatprep.subr.mxu1 %v1071_v23  ;;  %v1116_v40 = vmul.f32 %v2017_v17, %v2997_v39  ;;  %v3000_v38 = vld [vmem:[#allocation12_spill] sm:$0xff]  ;;  %v3001_v23 = vld [vmem:[#allocation53_spill] sm:$0xff]  ;;  %v3012_v39 = vld [vmem:[#allocation47_spill] sm:$0xff] }
 0x14b   :  { %v2021_v3 = vpop.eup %2020  ;;  %2046 = vrcp.f32 %v902_v30  ;;  %1641 = vmatpush3.msra.mxu1 %v1055_v9  ;;  %v899_v55 = vadd.f32 1.0, %v2019_v8  ;;  %v1115_v30 = vmul.f32 %v2778_v51, %v2999_v34  ;;  %v3002_v17 = vld [vmem:[#allocation24_spill] sm:$0xff]  ;;  %v896_v51 = vadd.f32 1.0, %v2792_v5  ;;  %v3008_v5 = vld [vmem:[#allocation26_spill] sm:$0xff] }
 0x14c   :  { %v2023_v29 = vpop.eup %2022  ;;  %2048 = vrcp.f32 %v917_v16  ;;  %1642 = vmatprep.subr.mxu1 %v1070_v18  ;;  %v897_v59 = vadd.f32 1.0, %v2021_v3  ;;  %v912_v45 = vadd.f32 1.0, %v3002_v17  ;;  %v3004_v8 = vld [vmem:[#allocation56_spill] sm:$0xff]  ;;  %v3006_v3 = vld [vmem:[#allocation50_spill] sm:$0xff]  ;;  %v910_v63 = vadd.f32 1.0, %v3008_v5  ;;  %v3016_v17 = vld [vmem:[#allocation21_spill] sm:$0xff] }
 0x14d   :  { %v2025_v1 = vpop.eup %2024  ;;  %2050 = vrcp.f32 %v901_v50  ;;  %1643 = vmatpush3.msra.mxu1 %v1054_v15  ;;  %v898_v48 = vadd.f32 1.0, %v2023_v29  ;;  %v1113_v7 = vmul.f32 %v2785_v41, %v3006_v3  ;;  %v3021_v5 = vld [vmem:[#allocation8_spill] sm:$0xff] }
 0x14e   :  { %v2027_v47 = vpop.eup %2026  ;;  %2052 = vrcp.f32 %v916_v52  ;;  %v1100_v57 = vmul.f32 %v2025_v1, %v2665_v35  ;;  %1644 = vmatprep.subr.mxu1 %v1069_v4  ;;  %v911_v52 = vadd.f32 1.0, %v3005_v49  ;;  %v3009_v4 = vld [vmem:[#allocation46_spill] sm:$0xff] }
 0x14f   :  { %v2029_v42 = vpop.eup %2028  ;;  %2054 = vrcp.f32 %v900_v28  ;;  %1645 = vmatpush3.msra.mxu1 %v1053_v10  ;;  %v1099_v35 = vmul.f32 %v2027_v47, %v3001_v23  ;;  %v3007_v28 = vld [vmem:[#allocation55_spill] sm:$0xff]  ;;  %v1112_v53 = vmul.f32 %v2772_v46, %v3009_v4  ;;  %v909_v10 = vadd.f32 1.0, %v3010_v27 }
 0x150   :  { %v2031_v44 = vpop.eup %2030  ;;  %2056 = vrcp.f32 %v915_v56  ;;  %1205 = vmatmul.mubr.f32.vlgmr.msra.gmra.mxu1 %v3000_v38  ;;  %1649 = vmatprep.subr.mxu1 %v1116_v40  ;;  %v1114_v9 = vmul.f32 %v2029_v42, %v3003_v32  ;;  %v2115_v4 = vmov 0.0  }
 0x151   :  { %v2033_v2 = vpop.eup %2032  ;;  %2058 = vrcp.f32 %v899_v55  ;;  %1650 = vmatpush3.msra.mxu1 %v1100_v57  ;;  %1274 = vmatprep.mubr.f32.mxu1 %v1135_v11  ;;  %v1098_v37 = vmul.f32 %v2031_v44, %v3004_v8  ;;  %v3011_v55 = vld [vmem:[#allocation39_spill] sm:$0xff] }
 0x152   :  { %v2035_v16 = vpop.eup %2034  ;;  %2060 = vrcp.f32 %v914_v19  ;;  %1651 = vmatprep.subr.mxu1 %v1115_v30  ;;  %v895_v15 = vadd.f32 1.0, %v2033_v2  ;;  %v1111_v11 = vmul.f32 %v2727_v14, %v3011_v55  ;;  %v3013_v14 = vld [vmem:[#allocation44_spill] sm:$0xff]  ;;  %v3015_v2 = vld [vmem:[#allocation15_spill] sm:$0xff] }
 0x153   :  { %v2037_v50 = vpop.eup %2036  ;;  %2062 = vrcp.f32 %v898_v48  ;;  %1652 = vmatpush3.msra.mxu1 %v1099_v35  ;;  %v1097_v29 = vmul.f32 %v2035_v16, %v3007_v28 }
 0x154   :  { %v2039_v18 = vpop.eup %2038  ;;  %2064 = vrcp.f32 %v913_v36  ;;  %1653 = vmatprep.subr.mxu1 %v1114_v9  ;;  %v894_v1 = vadd.f32 1.0, %v2037_v50  ;;  %v3014_v36 = vld [vmem:[#allocation19_spill] sm:$0xff]  ;;  %v3017_v50 = vld [vmem:[#allocation18_spill] sm:$0xff] }
 0x155   :  { %v2041_v58 = vpop.eup %2040  ;;  %2066 = vrcp.f32 %v897_v59  ;;  %1654 = vmatpush3.msra.mxu1 %v1098_v37  ;;  %v1096_v41 = vmul.f32 %v2039_v18, %v2678_v26  ;;  %v3018_v18 = vld [vmem:[#allocation10_spill] sm:$0xff] }
 0x156   :  { %v2043_v21 = vpop.eup %2042  ;;  %2068 = vrcp.f32 %v912_v45  ;;  %1655 = vmatprep.subr.mxu1 %v1113_v7  ;;  %v893_v13 = vadd.f32 1.0, %v2041_v58  ;;  %v3019_v7 = vld [vmem:[#allocation6_spill] sm:$0xff] }
 0x157   :  { %v2045_v56 = vpop.eup %2044  ;;  %2070 = vrcp.f32 %v896_v51  ;;  %1656 = vmatpush3.msra.mxu1 %v1097_v29  ;;  %v1095_v46 = vmul.f32 %v2043_v21, %v2684_v25  ;;  %v3020_v29 = vld [vmem:[#allocation13_spill] sm:$0xff] }
 0x158   :  { %v2047_v24 = vpop.eup %2046  ;;  %2072 = vrcp.f32 %v911_v52  ;;  %1657 = vmatprep.subr.mxu1 %v1112_v53  ;;  %v1110_v40 = vmul.f32 %v2045_v56, %v3012_v39 }
 0x159   :  { %v2049_v47 = vpop.eup %2048  ;;  %2074 = vrcp.f32 %v895_v15  ;;  %1658 = vmatpush3.msra.mxu1 %v1096_v41  ;;  %v1094_v57 = vmul.f32 %v2047_v24, %v2695_v54 }
 0x15a   :  { %v2051_v19 = vpop.eup %2050  ;;  %2076 = vrcp.f32 %v910_v63  ;;  %1659 = vmatprep.subr.mxu1 %v1111_v11  ;;  %v1109_v48 = vmul.f32 %v2049_v47, %v3013_v14  ;;  %v1827_v11 = vld [vmem:[%s2881_s5] sm:$0xff]  }
 0x15b   :  { %v2053_v26 = vpop.eup %2052  ;;  %2078 = vrcp.f32 %v894_v1  ;;  %1660 = vmatpush3.msra.mxu1 %v1095_v46  ;;  %v1093_v25 = vmul.f32 %v2051_v19, %v2703_v6 }
 0x15c   :  { %v2055_v42 = vpop.eup %2054  ;;  %2080 = vrcp.f32 %v909_v10  ;;  %1661 = vmatprep.subr.mxu1 %v1110_v40  ;;  %v1108_v34 = vmul.f32 %v2053_v26, %v3014_v36  ;;  %v1826_v10 = vld [vmem:[%s2881_s5 + $0x8] ss:$0 sps:$4 sm:$0xff]   ;;  %s2117_s5 = smov [#allocation2]  }
 0x15d   :  { %v2057_v44 = vpop.eup %2056  ;;  %2082 = vrcp.f32 %v893_v13  ;;  %1662 = vmatpush3.msra.mxu1 %v1094_v57  ;;  %v1092_v38 = vmul.f32 %v2055_v42, %v2716_v0  ;;  %v1374_v55 = vsel %vm1372_vm4, %v1826_v10, 0  ;;  %s1430_s9 = sshll.u32 %s2117_s5, 4  ;;  %s1431_s9 = int_to_ptr.vmem [resolvable:$true] %s1430_s9 }
 0x15e   :  { %v2059_v31 = vpop.eup %2058  ;;  %1663 = vmatprep.subr.mxu1 %v1109_v48  ;;  %v1107_v59 = vmul.f32 %v2057_v44, %v3015_v2  ;;  %v1574_v48 = vld [vmem:[%s2882_s6] ss:$0 sm:$0xff]  ;;  %s2092_s10 = scalar_lea.vmem %s1431_s9, 32  ;;  %p2097_p1 = scmp.lt.s32.totalorder %s1431_s9, %s1431_s9 }
 0x15f   :  { %v2061_v30 = vpop.eup %2060  ;;  %1664 = vmatpush3.msra.mxu1 %v1093_v25  ;;  %v1091_v35 = vmul.f32 %v2059_v31, %v2724_v22  ;;  %p2093_p0 = scmp.ne.s32.totalorder %s1431_s9, %s2092_s10  ;;  %p2098_p2 = scmp.lt.s32.totalorder %s2092_s10, %s2092_s10 }
 0x160   :  { %v2063_v54 = vpop.eup %2062  ;;  %1665 = vmatprep.subr.mxu1 %v1108_v34  ;;  %v1106_v6 = vmul.f32 %v2061_v30, %v3016_v17 }
 0x161   :  { %v2065_v23 = vpop.eup %2064  ;;  %1666 = vmatpush3.msra.mxu1 %v1092_v38  ;;  %v1090_v32 = vmul.f32 %v2063_v54, %v2740_v60  ;;  %p2099_p3 = por %p2098_p2, %p2097_p1 }
 0x162   :  { %v2067_v16 = vpop.eup %2066  ;;  %1667 = vmatprep.subr.mxu1 %v1107_v59  ;;  %v1105_v0 = vmul.f32 %v2065_v23, %v3017_v50 }
 0x163   :  { %v2069_v45 = vpop.eup %2068  ;;  %1668 = vmatpush3.msra.mxu1 %v1091_v35  ;;  %v1089_v8 = vmul.f32 %v2067_v16, %v2733_v33  ;;  %p2100_p4 = pnand %p2099_p3, %p2093_p0 }
 0x164   :  { %v2071_v9 = vpop.eup %2070  ;;  %1669 = vmatprep.subr.mxu1 %v1106_v6  ;;  %v1104_v22 = vmul.f32 %v2069_v45, %v3018_v18 }
 0x165   :  { %v2073_v51 = vpop.eup %2072  ;;  %1670 = vmatpush3.msra.mxu1 %v1090_v32  ;;  %v1088_v52 = vmul.f32 %v2071_v9, %v2710_v61 }
 0x166   :  { %v2075_v37 = vpop.eup %2074  ;;  %1671 = vmatprep.subr.mxu1 %v1105_v0  ;;  %v1103_v60 = vmul.f32 %v2073_v51, %v3019_v7 }
 0x167   :  { %v2077_v49 = vpop.eup %2076  ;;  %1672 = vmatpush3.msra.mxu1 %v1089_v8  ;;  %v1087_v15 = vmul.f32 %v2075_v37, %v2754_v20  ;;  %v1824_v20 = vld [vmem:[%s2880_s4 + $0x8] sm:$0xff]  }
 0x168   :  { %v2079_v3 = vpop.eup %2078  ;;  %1673 = vmatprep.subr.mxu1 %v1104_v22  ;;  %v1102_v33 = vmul.f32 %v2077_v49, %v3020_v29 }
 0x169   :  { %v2081_v58 = vpop.eup %2080  ;;  %1674 = vmatpush3.msra.mxu1 %v1088_v52  ;;  %v1086_v21 = vmul.f32 %v2079_v3, %v2760_v43  ;;  %v1825_v43 = vld [vmem:[%s2880_s4] sm:$0xff]  }
 0x16a   :  { %v2083_v28 = vpop.eup %2082  ;;  %1675 = vmatprep.subr.mxu1 %v1103_v60  ;;  %v1101_v63 = vmul.f32 %v2081_v58, %v3021_v5 }
 0x16b   :  { %1676 = vmatpush3.msra.mxu1 %v1087_v15  ;;  %v1085_v61 = vmul.f32 %v2083_v28, %v2770_v62 }
 0x16c   :  { %1677 = vmatprep.subr.mxu1 %v1102_v33 }
 0x16d   :  { %1678 = vmatpush3.msra.mxu1 %v1086_v21 }
 0x16e   :  { %1679 = vmatprep.subr.mxu1 %v1101_v63 }
 0x16f   :  { %1680 = vmatpush3.msra.mxu1 %v1085_v61 }
 0x170   :  { %1275 = vmatmul.mubr.f32.vlgmr.msra.gmra.mxu1 %v2995_v12  ;;  %1760 = vmatprep.subr.bf16.mxu1 %v2115_v4 }
 0x171   :  { %1761 = vmatpush3.bf16.msra.mxu1 %v1824_v20  ;;  %1764 = vmatprep.mubr.msk.bf16.mxu1 %vm2116_vm2, %v2115_v4 }
 0x172   :  { %1762 = vmatprep.subr.bf16.mxu1 %v2115_v4 }
 0x175   :  { %1763 = vmatpush3.bf16.msra.mxu1 %v1825_v43 }
 0x176   :  { %1768 = vmatprep.subr.bf16.mxu1 %v2115_v4 }
 0x210   :  { %v1646_v62 = vpop.f32.mrf.mxu1 }
 0x212   :  { %v1647_v53 = vpop.f32.mrf.mxu1 }
 0x213   :  { %v1648_v1 = vadd.f32 %v1647_v53, %v1646_v62 }
 0x230   :  { %v1681_v56 = vpop.f32.mrf.mxu1 }
 0x232   :  { %v1682_v12 = vpop.f32.mrf.mxu1 }
 0x233   :  { %v1683_v41 = vadd.f32 %v1682_v12, %v1681_v56 }
 0x235   :  { %v1277_v24 = vadd.f32 %v1683_v41, %v1648_v1 }
 0x237   :  { %v1280_v27 = vpack.c.bf16 %v1277_v24, %v1277_v24 }
 0x239   :  { %1765 = vmatmul.mubr.msk.bf16.vlgmr.msra.gmra.mxu1 %vm1297_vm3, %v1280_v27 }
 0x23a   :  { %1772 = vmatprep.mubr.msk.bf16.mxu1 %vm2116_vm2, %v2115_v4  ;;  %1769 = vmatpush3.bf16.msra.mxu1 %v1374_v55 }
 0x23b   :  { %1770 = vmatprep.subr.bf16.mxu1 %v2115_v4 }
 0x23e   :  { %1771 = vmatpush3.bf16.msra.mxu1 %v1827_v11 }
 0x2f9   :  { %v1335_v47 = vpop.f32.mrf.mxu1 }
 0x2fa   :  { %v1573_v13 = vmul.f32 -1.442695, %v1335_v47 }
 0x2fb   :  { %v1766_v46 = vpop.f32.mrf.mxu1 }
 0x2fc   :  { %2084 = vpow2.f32 %v1573_v13 }
 0x2fd   :  { %v1338_v19 = vpop.f32.mrf.mxu1 }
 0x2ff   :  { %v1767_v39 = vpop.f32.mrf.mxu1 }
 0x309   :  { %v2085_v40 = vpop.eup %2084 }
 0x30a   :  { %v1344_v26 = vadd.f32 1.0, %v2085_v40 }
 0x30c   :  { %2086 = vrcp.f32 %v1344_v26 }
 0x319   :  { %v2087_v57 = vpop.eup %2086 }
 0x31a   :  { %v1347_v42 = vmul.f32 %v2087_v57, %v1335_v47 }
 0x31c   :  { %v1348_v14 = vpack.c.bf16 %v1347_v42, %v1347_v42 }
 0x31e   :  { %1773 = vmatmul.mubr.msk.bf16.vlgmr.msra.gmra.mxu1 %vm1368_vm5, %v1348_v14 }
 0x3de   :  { %v1410_v44 = vpop.f32.mrf.mxu1 }
 0x3df   :  { %v1411_v25 = vadd.f32 %v1574_v48, %v1410_v44 }
 0x3e0   :  { %v1774_v31 = vpop.f32.mrf.mxu1 }
 0x3e1   :  { %v1578_v36 = vmul.f32 -1.442695, %v1411_v25 }
 0x3e2   :  { %v1413_v34 = vpop.f32.mrf.mxu1 }
 0x3e3   :  { %2088 = vpow2.f32 %v1578_v36 }
 0x3e4   :  { %v1775_v30 = vpop.f32.mrf.mxu1 }
 0x3f0   :  { %v2089_v38 = vpop.eup %2088 }
 0x3f1   :  { %v1419_v54 = vadd.f32 1.0, %v2089_v38 }
 0x3f3   :  { %2090 = vrcp.f32 %v1419_v54 }
 0x400   :  { %v2091_v2 = vpop.eup %2090 }
 0x401   :  { %1423 = vst.msk [vmem:[#allocation2] sm:$0x3] %vm1422_vm6, %v2091_v2 }
 0x402   :  { %2103 = shalt.err (!%p2100_p4)
}
 0x403   :  { %1433 = dma.vmem_to_hbm [thread:$0]  %s1431_s9, 32, %s2883_s7, [#allocation3]  }
 0x404   :  { %2112 = dma.done.wait [#allocation3], 32  }
 0x405   :  { %2113 = vsyncadd [#allocation3], 4294967264 }
 0x406   :  { %1437 = vsyncpa [#allocation3], 1 }

</bundles_post_ra>
